<compile_context>
chip_gen: v7x
topology: tpu7x:2x2x1
jax: 0.10.0
libtpu: 0.0.40
codegen_flags: <defaults>
</compile_context>

<pallas_src>
import math

import jax
import jax.numpy as jnp
import numpy as np
from jax.experimental import pallas as pl
from jax.experimental.pallas import tpu as pltpu


def get_kernel_num(C, gamma=2, b=1):
    t = math.log2(C) / gamma + b / gamma
    floor = math.floor(t)
    return floor + (1 - floor % 2)


def _vmem_capacity_bytes():
    """Physical VMEM of the current generation (fallback: v7x's 64 MiB)."""
    try:
        return int(pltpu.get_tpu_info().vmem_capacity_bytes)
    except Exception:
        return 64 * 1024 * 1024


def _choose_tiles(B, C, HW, itemsize, block_budget):
    """Pick (Bt, THW) so one input block fits block_budget and, when B >= 2,
    the batch grid axis has at least 2 steps (megacore sharding on v7x)."""
    row_bytes = C * itemsize
    bt_cap = B if B < 2 else -(-B // 2)          # ceil(B/2) when B >= 2
    if HW * row_bytes <= block_budget:
        bt = int(min(bt_cap, max(1, block_budget // (HW * row_bytes))))
        return bt, HW
    # Tile the spatial axis in multiples of 128 lanes (BlockSpec constraint).
    thw = int(max(128, (block_budget // row_bytes) // 128 * 128))
    thw = min(thw, HW)
    # TODO(synk): for B == 1 with very large HW, split HW into two "parallel"
    # halves (per-half sum/max partials + a tiny combine pass) so v7x's second
    # TensorCore is not idle.
    return 1, thw


def _make_kernel(C, HW, THW, k, has_tail, max_dtype):
    pad = k // 2

    def kernel(params_ref, w_ref, x_ref, o_ref, sum_ref, max_ref):
        # params_ref: SMEM (4,) -> [0.5+alpha, 0.5+beta, conv_bias, 1/HW]
        # w_ref:      SMEM (k,) -> conv1d weights
        # x_ref:      VMEM (Bt, C, THW) spatial tile (native dtype)
        # o_ref:      VMEM (Bt, 1, C)
        # sum_ref:    VMEM (Bt, C) f32 running sum
        # max_ref:    VMEM (Bt, C) max_dtype running max
        hw_idx = pl.program_id(1)
        n_hw = pl.num_programs(1)

        @pl.when(hw_idx == 0)
        def _init():
            sum_ref[...] = jnp.zeros(sum_ref.shape, sum_ref.dtype)
            max_ref[...] = jnp.full(max_ref.shape, -jnp.inf, max_ref.dtype)

        x = x_ref[...]                                    # (Bt, C, THW)

        def _accumulate(apply_mask):
            xs = x.astype(jnp.float32)
            xm = x.astype(max_dtype)
            if apply_mask:
                col = jax.lax.broadcasted_iota(jnp.int32, x.shape, 2)
                valid = (hw_idx * THW + col) < HW
                xs = jnp.where(valid, xs, 0.0)
                xm = jnp.where(valid, xm, jnp.array(-jnp.inf, max_dtype))
            sum_ref[...] = sum_ref[...] + jnp.sum(xs, axis=2)          # (Bt, C)
            max_ref[...] = jnp.maximum(max_ref[...], jnp.max(xm, axis=2))

        if has_tail:
            # Keep the mask (iota + 2x where per element) off the hot interior
            # steps; only the final spatial block has padded columns.
            @pl.when(hw_idx < n_hw - 1)
            def _interior():
                _accumulate(False)

            @pl.when(hw_idx == n_hw - 1)
            def _tail():
                _accumulate(True)
        else:
            _accumulate(False)

        @pl.when(hw_idx == n_hw - 1)
        def _finalize():
            ca = params_ref[0]        # 0.5 + alpha
            cb = params_ref[1]        # 0.5 + beta
            bias = params_ref[2]
            inv_hw = params_ref[3]    # 1 / (H*W)

            f_avg = sum_ref[...] * inv_hw                         # (Bt, C)
            f_max = max_ref[...].astype(jnp.float32)
            f_add = ca * f_avg + cb * f_max                       # (Bt, C)

            # Zero-padded 1D conv along the channel (lane) axis via rolls.
            cidx = jax.lax.broadcasted_iota(jnp.int32, f_add.shape, 1)
            acc = jnp.full(f_add.shape, bias, dtype=jnp.float32)
            for j in range(k):
                off = j - pad
                if off == 0:
                    shifted = f_add
                else:
                    # shifted[c] = f_add[c + off] (circular; masked below)
                    shifted = pltpu.roll(f_add, shift=(-off) % C, axis=1)
                valid_c = jnp.logical_and(cidx + off >= 0, cidx + off < C)
                acc = acc + w_ref[j] * jnp.where(valid_c, shifted, 0.0)

            o_ref[:, 0, :] = jax.nn.sigmoid(acc).astype(o_ref.dtype)

    return kernel


def channel_attention(x, alpha, beta, conv_w, conv_b):
    """x: (B, C, H, W) -> (B, C, 1, 1). Input dtype is read natively."""
    B, C, H, W = x.shape
    HW = H * W
    k = int(conv_w.shape[-1])
    itemsize = x.dtype.itemsize

    # Free view: merge H, W (no transpose, no cast -> no extra HBM traffic).
    x_flat = x.reshape(B, C, HW)

    # Generation-aware VMEM plan: use ~70% of physical VMEM, two buffers per
    # input block (default double-buffering) + a little fixed headroom.
    cap = _vmem_capacity_bytes()
    vmem_target = min(int(cap * 0.70), 100 * 1024 * 1024)
    block_budget = max((vmem_target - (4 << 20)) // 2, 2 << 20)

    Bt, THW = _choose_tiles(B, C, HW, itemsize, block_budget)
    grid = (pl.cdiv(B, Bt), pl.cdiv(HW, THW))
    has_tail = (HW % THW) != 0

    # Running max is exact in the native dtype; keep bf16 native (half the
    # widening casts / VPU width on v6e+), everything else accumulates in f32.
    max_dtype = jnp.bfloat16 if x.dtype == jnp.bfloat16 else jnp.float32

    # Explicit scoped-VMEM limit sized to the actual plan (v5e default is only
    # 16 MiB; v7x physical is 64 MiB -> stay well under it).
    block_bytes = Bt * C * THW * itemsize
    plan_bytes = (2 * block_bytes                       # double-buffered input
                  + 2 * Bt * C * max(itemsize, 4)       # output block
                  + 2 * Bt * C * 4                      # scratch accumulators
                  + (2 << 20))                          # headroom
    vmem_limit = int(min(max(plan_bytes, 8 << 20), cap - (8 << 20)))

    params = jnp.stack(
        [
            (0.5 + alpha.reshape(())).astype(jnp.float32),
            (0.5 + beta.reshape(())).astype(jnp.float32),
            conv_b.reshape(()).astype(jnp.float32),
            jnp.asarray(1.0 / HW, dtype=jnp.float32),
        ]
    )
    w = conv_w.reshape(k).astype(jnp.float32)

    cost = pl.CostEstimate(
        flops=3 * B * HW * C,
        transcendentals=B * C,
        bytes_accessed=B * HW * C * itemsize + B * C * itemsize,
    )

    out = pl.pallas_call(
        _make_kernel(C, HW, THW, k, has_tail, max_dtype),
        out_shape=jax.ShapeDtypeStruct((B, 1, C), x.dtype),
        grid=grid,
        in_specs=[
            pl.BlockSpec(memory_space=pltpu.MemorySpace.SMEM),    # params
            pl.BlockSpec(memory_space=pltpu.MemorySpace.SMEM),    # conv weights
            pl.BlockSpec((Bt, C, THW), lambda b, h: (b, 0, h)),   # x tile
        ],
        out_specs=pl.BlockSpec((Bt, 1, C), lambda b, h: (b, 0, 0)),
        scratch_shapes=[
            pltpu.VMEM((Bt, C), jnp.float32),   # running sum (always f32)
            pltpu.VMEM((Bt, C), max_dtype),     # running max (native if bf16)
        ],
        compiler_params=pltpu.CompilerParams(
            dimension_semantics=("parallel", "arbitrary"),
            vmem_limit_bytes=vmem_limit,
        ),
        cost_estimate=cost,
    )(params, w, x_flat)

    return out.reshape(B, C, 1, 1)


def channel_attention_reference(x, alpha, beta, conv_w, conv_b):
    """Pure-JAX reference matching the PyTorch forward."""
    B, C, H, W = x.shape
    avg = jnp.mean(x, axis=(2, 3))   # (B, C)
    mx = jnp.max(x, axis=(2, 3))     # (B, C)
    f_add = 0.5 * (avg + mx) + alpha * avg + beta * mx
    k = conv_w.shape[-1]
    pad = k // 2
    f = jnp.pad(f_add, ((0, 0), (pad, pad)))
    out = conv_b[0] + sum(conv_w[0, 0, j] * f[:, j:j + C] for j in range(k))
    return jax.nn.sigmoid(out).reshape(B, C, 1, 1)


if __name__ == "__main__":
    B, C, H, W = 2, 16, 8, 8
    key = jax.random.PRNGKey(0)
    kx, kw, kb = jax.random.split(key, 3)

    x = jax.random.normal(kx, (B, C, H, W), dtype=jnp.float32)

    # Deterministic parameter init (shapes follow nn.Conv1d(1, 1, k, padding=k//2)).
    k = get_kernel_num(C)            # C=16 -> k=3
    bound = 1.0 / math.sqrt(k)
    conv_w = jax.random.uniform(kw, (1, 1, k), jnp.float32, -bound, bound)
    conv_b = jax.random.uniform(kb, (1,), jnp.float32, -bound, bound)
    alpha = jnp.array([0.5], dtype=jnp.float32)
    beta = jnp.array([0.5], dtype=jnp.float32)

    out = channel_attention(x, alpha, beta, conv_w, conv_b)
    jax.block_until_ready(out)

    ref = channel_attention_reference(x, alpha, beta, conv_w, conv_b)
    assert out.shape == (B, C, 1, 1)
    assert np.allclose(np.asarray(out), np.asarray(ref), rtol=1e-5, atol=1e-5)
    print("KERNEL_OK")
</pallas_src>

<mosaic_0001>
module attributes {stable_mosaic.version = 11 : i64} {
  func.func @kernel(%arg0: i32, %arg1: i32, %arg2: memref<4xf32, #tpu.memory_space<smem>>, %arg3: memref<3xf32, #tpu.memory_space<smem>>, %arg4: memref<1x16x64xf32, #tpu.memory_space<vmem>>, %arg5: memref<1x1x16xf32, #tpu.memory_space<vmem>>, %arg6: memref<1x16xf32, #tpu.memory_space<vmem>>, %arg7: memref<1x16xf32, #tpu.memory_space<vmem>>) attributes {dimension_semantics = [#tpu.dimension_semantics<parallel>, #tpu.dimension_semantics<arbitrary>], iteration_bounds = array<i64: 2, 1>, scalar_prefetch = 0 : i64, scratch_operands = 2 : i64, tpu.core_type = #tpu.core_type<tc>, window_params = [{transform_indices = @transform_0, window_bounds = array<i64: 4>}, {transform_indices = @transform_1, window_bounds = array<i64: 3>}, {transform_indices = @transform_2, window_bounds = array<i64: 1, 16, 64>}, {transform_indices = @transform_3, window_bounds = array<i64: 1, 1, 16>}]} {
    %c0_i32 = arith.constant 0 : i32
    %0 = arith.cmpi eq, %arg1, %c0_i32 : i32
    %1 = arith.extui %0 : i1 to i32
    %c0_i32_0 = arith.constant 0 : i32
    %2 = arith.cmpi ne, %1, %c0_i32_0 : i32
    scf.if %2 {
      %cst_14 = arith.constant 0.000000e+00 : f32
      %15 = vector.broadcast %cst_14 : f32 to vector<1x16xf32>
      %c0_15 = arith.constant 0 : index
      %c0_16 = arith.constant 0 : index
      %16 = vector.load %arg6[%c0_15, %c0_16] : memref<1x16xf32, #tpu.memory_space<vmem>>, vector<1x16xf32>
      tpu.vector_store %arg6[%c0_15, %c0_16], %15 {strides = array<i32>} : memref<1x16xf32, #tpu.memory_space<vmem>>, vector<1x16xf32>,
      %cst_17 = arith.constant 0xFF800000 : f32
      %17 = vector.broadcast %cst_17 : f32 to vector<1x16xf32>
      %c0_18 = arith.constant 0 : index
      %c0_19 = arith.constant 0 : index
      %18 = vector.load %arg7[%c0_18, %c0_19] : memref<1x16xf32, #tpu.memory_space<vmem>>, vector<1x16xf32>
      tpu.vector_store %arg7[%c0_18, %c0_19], %17 {strides = array<i32>} : memref<1x16xf32, #tpu.memory_space<vmem>>, vector<1x16xf32>,
    } else {
    }
    %c0 = arith.constant 0 : index
    %c0_1 = arith.constant 0 : index
    %c0_2 = arith.constant 0 : index
    %3 = vector.load %arg4[%c0, %c0_1, %c0_2] : memref<1x16x64xf32, #tpu.memory_space<vmem>>, vector<1x16x64xf32>
    %c0_3 = arith.constant 0 : index
    %c0_4 = arith.constant 0 : index
    %4 = vector.load %arg6[%c0_3, %c0_4] : memref<1x16xf32, #tpu.memory_space<vmem>>, vector<1x16xf32>
    %cst = arith.constant dense<0.000000e+00> : vector<1x16xf32>
    %5 = vector.multi_reduction <add>, %3, %cst [2] : vector<1x16x64xf32> to vector<1x16xf32>
    %6 = arith.addf %4, %5 : vector<1x16xf32>
    %c0_5 = arith.constant 0 : index
    %c0_6 = arith.constant 0 : index
    %7 = vector.load %arg6[%c0_5, %c0_6] : memref<1x16xf32, #tpu.memory_space<vmem>>, vector<1x16xf32>
    tpu.vector_store %arg6[%c0_5, %c0_6], %6 {strides = array<i32>} : memref<1x16xf32, #tpu.memory_space<vmem>>, vector<1x16xf32>,
    %c0_7 = arith.constant 0 : index
    %c0_8 = arith.constant 0 : index
    %8 = vector.load %arg7[%c0_7, %c0_8] : memref<1x16xf32, #tpu.memory_space<vmem>>, vector<1x16xf32>
    %cst_9 = arith.constant dense<0xFF800000> : vector<1x16xf32>
    %9 = vector.multi_reduction <maximumf>, %3, %cst_9 [2] : vector<1x16x64xf32> to vector<1x16xf32>
    %10 = arith.maximumf %8, %9 : vector<1x16xf32>
    %c0_10 = arith.constant 0 : index
    %c0_11 = arith.constant 0 : index
    %11 = vector.load %arg7[%c0_10, %c0_11] : memref<1x16xf32, #tpu.memory_space<vmem>>, vector<1x16xf32>
    tpu.vector_store %arg7[%c0_10, %c0_11], %10 {strides = array<i32>} : memref<1x16xf32, #tpu.memory_space<vmem>>, vector<1x16xf32>,
    %c0_i32_12 = arith.constant 0 : i32
    %12 = arith.cmpi eq, %arg1, %c0_i32_12 : i32
    %13 = arith.extui %12 : i1 to i32
    %c0_i32_13 = arith.constant 0 : i32
    %14 = arith.cmpi ne, %13, %c0_i32_13 : i32
    scf.if %14 {
      %c0_14 = arith.constant 0 : index
      %15 = memref.load %arg2[%c0_14] : memref<4xf32, #tpu.memory_space<smem>>
      %c1 = arith.constant 1 : index
      %16 = memref.load %arg2[%c1] : memref<4xf32, #tpu.memory_space<smem>>
      %c2 = arith.constant 2 : index
      %17 = memref.load %arg2[%c2] : memref<4xf32, #tpu.memory_space<smem>>
      %c3 = arith.constant 3 : index
      %18 = memref.load %arg2[%c3] : memref<4xf32, #tpu.memory_space<smem>>
      %c0_15 = arith.constant 0 : index
      %c0_16 = arith.constant 0 : index
      %19 = vector.load %arg6[%c0_15, %c0_16] : memref<1x16xf32, #tpu.memory_space<vmem>>, vector<1x16xf32>
      %20 = vector.broadcast %18 : f32 to vector<1x16xf32>
      %21 = arith.mulf %19, %20 : vector<1x16xf32>
      %c0_17 = arith.constant 0 : index
      %c0_18 = arith.constant 0 : index
      %22 = vector.load %arg7[%c0_17, %c0_18] : memref<1x16xf32, #tpu.memory_space<vmem>>, vector<1x16xf32>
      %23 = vector.broadcast %15 : f32 to vector<1x16xf32>
      %24 = arith.mulf %23, %21 : vector<1x16xf32>
      %25 = vector.broadcast %16 : f32 to vector<1x16xf32>
      %26 = arith.mulf %25, %22 : vector<1x16xf32>
      %27 = arith.addf %24, %26 : vector<1x16xf32>
      %28 = tpu.iota {dimensions = array<i32: 1>} : vector<1x16xi32>
      %29 = vector.broadcast %17 : f32 to vector<1x16xf32>
      %c1_i32 = arith.constant 1 : i32
      %30 = tpu.dynamic_rotate %27 by %c1_i32 dim 1 : vector<1x16xf32>, i32 -> vector<1x16xf32>
      %c-1_i32 = arith.constant -1 : i32
      %31 = vector.broadcast %c-1_i32 : i32 to vector<1x16xi32>
      %32 = arith.addi %28, %31 : vector<1x16xi32>
      %c0_i32_19 = arith.constant 0 : i32
      %33 = vector.broadcast %c0_i32_19 : i32 to vector<1x16xi32>
      %34 = arith.cmpi sge, %32, %33 : vector<1x16xi32>
      %c-1_i32_20 = arith.constant -1 : i32
      %35 = vector.broadcast %c-1_i32_20 : i32 to vector<1x16xi32>
      %36 = arith.addi %28, %35 : vector<1x16xi32>
      %c16_i32 = arith.constant 16 : i32
      %37 = vector.broadcast %c16_i32 : i32 to vector<1x16xi32>
      %38 = arith.cmpi slt, %36, %37 : vector<1x16xi32>
      %39 = arith.andi %34, %38 : vector<1x16xi1>
      %c0_21 = arith.constant 0 : index
      %40 = memref.load %arg3[%c0_21] : memref<3xf32, #tpu.memory_space<smem>>
      %cst_22 = arith.constant 0.000000e+00 : f32
      %41 = vector.broadcast %cst_22 : f32 to vector<1x16xf32>
      %42 = arith.select %39, %30, %41 : vector<1x16xi1>, vector<1x16xf32>
      %43 = vector.broadcast %40 : f32 to vector<1x16xf32>
      %44 = arith.mulf %43, %42 : vector<1x16xf32>
      %45 = arith.addf %29, %44 : vector<1x16xf32>
      %c0_i32_23 = arith.constant 0 : i32
      %46 = vector.broadcast %c0_i32_23 : i32 to vector<1x16xi32>
      %47 = arith.addi %28, %46 : vector<1x16xi32>
      %c0_i32_24 = arith.constant 0 : i32
      %48 = vector.broadcast %c0_i32_24 : i32 to vector<1x16xi32>
      %49 = arith.cmpi sge, %47, %48 : vector<1x16xi32>
      %c0_i32_25 = arith.constant 0 : i32
      %50 = vector.broadcast %c0_i32_25 : i32 to vector<1x16xi32>
      %51 = arith.addi %28, %50 : vector<1x16xi32>
      %c16_i32_26 = arith.constant 16 : i32
      %52 = vector.broadcast %c16_i32_26 : i32 to vector<1x16xi32>
      %53 = arith.cmpi slt, %51, %52 : vector<1x16xi32>
      %54 = arith.andi %49, %53 : vector<1x16xi1>
      %c1_27 = arith.constant 1 : index
      %55 = memref.load %arg3[%c1_27] : memref<3xf32, #tpu.memory_space<smem>>
      %cst_28 = arith.constant 0.000000e+00 : f32
      %56 = vector.broadcast %cst_28 : f32 to vector<1x16xf32>
      %57 = arith.select %54, %27, %56 : vector<1x16xi1>, vector<1x16xf32>
      %58 = vector.broadcast %55 : f32 to vector<1x16xf32>
      %59 = arith.mulf %58, %57 : vector<1x16xf32>
      %60 = arith.addf %45, %59 : vector<1x16xf32>
      %c15_i32 = arith.constant 15 : i32
      %61 = tpu.dynamic_rotate %27 by %c15_i32 dim 1 : vector<1x16xf32>, i32 -> vector<1x16xf32>
      %c1_i32_29 = arith.constant 1 : i32
      %62 = vector.broadcast %c1_i32_29 : i32 to vector<1x16xi32>
      %63 = arith.addi %28, %62 : vector<1x16xi32>
      %c0_i32_30 = arith.constant 0 : i32
      %64 = vector.broadcast %c0_i32_30 : i32 to vector<1x16xi32>
      %65 = arith.cmpi sge, %63, %64 : vector<1x16xi32>
      %c1_i32_31 = arith.constant 1 : i32
      %66 = vector.broadcast %c1_i32_31 : i32 to vector<1x16xi32>
      %67 = arith.addi %28, %66 : vector<1x16xi32>
      %c16_i32_32 = arith.constant 16 : i32
      %68 = vector.broadcast %c16_i32_32 : i32 to vector<1x16xi32>
      %69 = arith.cmpi slt, %67, %68 : vector<1x16xi32>
      %70 = arith.andi %65, %69 : vector<1x16xi1>
      %c2_33 = arith.constant 2 : index
      %71 = memref.load %arg3[%c2_33] : memref<3xf32, #tpu.memory_space<smem>>
      %cst_34 = arith.constant 0.000000e+00 : f32
      %72 = vector.broadcast %cst_34 : f32 to vector<1x16xf32>
      %73 = arith.select %70, %61, %72 : vector<1x16xi1>, vector<1x16xf32>
      %74 = vector.broadcast %71 : f32 to vector<1x16xf32>
      %75 = arith.mulf %74, %73 : vector<1x16xf32>
      %76 = arith.addf %60, %75 : vector<1x16xf32>
      %77 = arith.negf %76 : vector<1x16xf32>
      %78 = math.exp %77 : vector<1x16xf32>
      %cst_35 = arith.constant 1.000000e+00 : f32
      %79 = vector.broadcast %cst_35 : f32 to vector<1x16xf32>
      %80 = arith.addf %79, %78 : vector<1x16xf32>
      %81 = arith.divf %79, %80 : vector<1x16xf32>
      %c0_36 = arith.constant 0 : index
      %c0_37 = arith.constant 0 : index
      %c0_38 = arith.constant 0 : index
      %82 = vector.load %arg5[%c0_36, %c0_37, %c0_38] : memref<1x1x16xf32, #tpu.memory_space<vmem>>, vector<1x1x16xf32>
      %83 = vector.shape_cast %82 : vector<1x1x16xf32> to vector<1x16xf32>
      %84 = vector.shape_cast %81 : vector<1x16xf32> to vector<1x1x16xf32>
      tpu.vector_store %arg5[%c0_36, %c0_37, %c0_38], %84 {strides = array<i32>} : memref<1x1x16xf32, #tpu.memory_space<vmem>>, vector<1x1x16xf32>,
    } else {
    }
    return
  }
  func.func @transform_0(%arg0: i32, %arg1: i32) -> i32 {
    %c0_i32 = arith.constant 0 : i32
    %c0_i32_0 = arith.constant 0 : i32
    return %c0_i32 : i32
  }
  func.func @transform_1(%arg0: i32, %arg1: i32) -> i32 {
    %c0_i32 = arith.constant 0 : i32
    %c0_i32_0 = arith.constant 0 : i32
    return %c0_i32 : i32
  }
  func.func @transform_2(%arg0: i32, %arg1: i32) -> (i32, i32, i32) {
    %c0_i32 = arith.constant 0 : i32
    %c0_i32_0 = arith.constant 0 : i32
    return %arg0, %c0_i32, %arg1 : i32, i32, i32
  }
  func.func @transform_3(%arg0: i32, %arg1: i32) -> (i32, i32, i32) {
    %c0_i32 = arith.constant 0 : i32
    %c0_i32_0 = arith.constant 0 : i32
    %c0_i32_1 = arith.constant 0 : i32
    return %arg0, %c0_i32, %c0_i32_0 : i32, i32, i32
  }
}

</mosaic_0001>

<bundles_post_ra>
// kernel: tpu_custom_call.1
= control target key start
LH: loop header
LB: loop body
LE: loop exit
PB: predicated region body
PF: predicated region fallthrough
CT: control target
= control target key end

     0   :  { %8 = vsyncpa [#allocation7], 0  ;;  %s1456_s0 = inlined_call_operand.hbm [shape: f32[4], index: 0, kind: input, shape index: {}]   ;;  %s1457_s1 = inlined_call_operand.vmem [shape: f32[3], index: 1, kind: input, shape index: {}]   ;;  %s1458_s2 = inlined_call_operand.hbm [shape: f32[2,16,64], index: 2, kind: input, shape index: {}]   ;;  %s1459_s3 = inlined_call_operand.hbm [shape: f32[2,1,16], index: 3, kind: output, shape index: {}]  }
   0x1   :  { %9 = vsyncpa [#allocation8], 0 }
   0x2   :  { %10 = vsyncpa [#allocation5], 0 }
   0x3   :  { %12 = vsyncpa [#allocation5 + $0x1], 0 }
   0x4   :  { %13 = vsyncpa [#allocation6], 0 }
   0x5   :  { %15 = vsyncpa [#allocation6 + $0x1], 0  ;;  %s1130_s12 = smov 0   ;;  %s1132_s13 = smov 0  }
   0x6   :  { %s1134_s14 = smov 0   ;;  %s1136_s15 = smov 0  }
   0x7   :  { %s1138_s16 = smov 0   ;;  %s1140_s17 = smov 0  }
   0x8 LB: > { %s826_s18 = sadd.s32 4294967295, %s1095_s17   ;;  %s827_s19 = sadd.s32 4294967294, %s1095_s17   ;;  %s1095_s17 = sphi %s1140_s17, %s21_s17   ;;  %s1091_s16 = sphi %s1138_s16, %s1480_s16   ;;  %s1087_s15 = sphi %s1136_s15, %s1479_s15   ;;  %s1083_s14 = sphi %s1134_s14, %s1478_s14   ;;  %s1079_s13 = sphi %s1132_s13, %s1477_s13   ;;  %s1075_s12 = sphi %s1130_s12, %s1476_s12  }
   0x9   : > { %s84_s20 = sadd.s32 1, %s1083_s14  ;;  %p91_p0 = scmp.ne.s32.totalorder %s1083_s14, %s1079_s13 }
   0xa   : > { %p92_p1 = scmp.eq.s32.totalorder %s1095_s17, 0  ;;  %p97_p2 = scmp.ne.s32.totalorder %s1079_s13, %s1075_s12 }
   0xb   : > { %p1168_p3 = scmp.eq.s32.totalorder %s826_s18, 0  ;;  %p121_p4 = scmp.eq.s32.totalorder %s826_s18, 1 }
   0xc   : > { %p93_p5 = por %p92_p1, %p91_p0  ;;  %p127_p6 = scmp.eq.s32.totalorder %s827_s19, 1 }
   0xd   : > { %s1464_s21 = scalar_select %p1168_p3, 1, 0 }
   0xe   : > { %p1174_p7 = por %p1168_p3, %p97_p2  ;;  %p1178_p8 = por %p121_p4, %p91_p0 }
   0xf   : > { %p1182_p9 = por %p127_p6, %p97_p2  ;;  %p828_p10 = scmp.ge.s32.totalorder %s1095_s17, 1 }
  0x10   : > { %s1465_s22 = scalar_select %p1174_p7, 1, 0 }
  0x11   : > { %s1466_s23 = scalar_select %p1178_p8, 1, 0 }
  0x12   : > { %s1467_s24 = scalar_select %p1182_p9, 1, 0 }
  0x13   : > { %p134_p11 = scmp.lt.s32.totalorder %s1095_s17, 3  ;;  %p878_p1 = scmp.lt.s32.totalorder %s1095_s17, 2 }
  0x14   : > { %s156_s28 = sshll.u32 %s1457_s1, 4  ;;  %s167_s4 = sand.u32 1, %s1083_s14   ;;  %s157_s28 = int_to_ptr.vmem [resolvable:$true] %s156_s28 }
  0x15   : > { %p1189_p13 = pnand %p828_p10, %p134_p11  ;;  %p1199_p4 = pnand %p878_p1, %p93_p5 }
  0x16   : > { %s33_s5 = sadd.s32 1, %s1091_s16  ;;  %s947_s8 = scalar_lea.hbm %s1456_s0, 16 }
  0x17   : > { %p861_p0 = pneg %p1189_p13  ;;  %p948_p5 = scmp.ne.s32.totalorder %s1456_s0, %s947_s8 }
  0x18   : > { %p954_p1 = scmp.lt.u32.totalorder %s947_s8, %s1456_s0 }
  0x19   : > { %p1205_p2 = pnand %p861_p0, %p1168_p3 }
  0x1b   : > { %p949_p6 = pneg %p1205_p2 }
  0x1d   : > { %p950_p10 = pnand %p949_p6, %p948_p5 }
  0x1f   : > { %p951_p11 = pneg %p950_p10 }
  0x21   : > { %p956_p0 = pnand %p954_p1, %p951_p11 }
  0x23   : > { %959 = shalt.err (!%p956_p0)
}
  0x24   : > { %s1097_s19 = smov [#allocation4]   ;;  %s960_s6 = scalar_lea.vmem %s157_s28, 16 }
  0x25   : > { %864 = dma.hbm_to_smem (!%p1205_p2), %s1456_s0, 16, %s1097_s19, [#allocation7]  }
  0x26   : > { %p961_p12 = scmp.ne.s32.totalorder %s157_s28, %s960_s6  ;;  %p968_p7 = scmp.lt.s32.totalorder %s157_s28, %s157_s28 }
  0x27   : > { %p969_p5 = scmp.lt.s32.totalorder %s960_s6, %s960_s6 }
  0x28   : > { %p963_p9 = pnand %p961_p12, %p949_p6 }
  0x29   : > { %p970_p10 = por %p969_p5, %p968_p7 }
  0x2a   : > { %p964_p8 = pneg %p963_p9 }
  0x2c   : > { %p971_p3 = pnand %p970_p10, %p964_p8 }
  0x2e   : > { %974 = shalt.err (!%p971_p3)
}
  0x2f   : > { %s1098_s7 = smov [#allocation9]   ;;  %p35_p11 = scmp.ge.s32.totalorder %s33_s5, 2 }
  0x30   : > { %867 = dma.vmem_to_smem (!%p1205_p2), %s157_s28, 16, %s1098_s7, [#allocation8]  }
  0x31   : > { %s832_s8 = sshll.u32 %s167_s4, 4  ;;  %s848_s9 = sshll.u32 %s1091_s16, 8 }
  0x32   : > { %s1482_s5 = smov (%p35_p11, %s33_s5), 0  ;;  %s1237_s30 = scalar_lea.hbm %s1458_s2, %s848_s9 }
  0x33   : > { %s79_s18 = ssub.s32 %s1091_s16, %s1482_s5  ;;  %s171_s19 = scalar_lea.vmem [#allocation10], %s832_s8 }
  0x34   : > { %s179_s28 = sshll.u32 %s171_s19, 4  ;;  %p82_p3 = scmp.eq.s32.totalorder %s79_s18, 0  ;;  %s1241_s28 = int_to_ptr.vmem [resolvable:$true] %s179_s28 }
  0x35   : > { %s1250_s27 = scalar_lea.sflag [#allocation5], %s167_s4  ;;  %s975_s6 = scalar_lea.hbm %s1237_s30, 256 }
  0x36   : > { %s1246_s26 = scalar_select %p82_p3, %s1083_s14, %s84_s20  }
  0x37   : > { %p976_p7 = scmp.ne.s32.totalorder %s1237_s30, %s975_s6  ;;  %p977_p8 = pneg %p1199_p4 }
  0x38   : > { %s980_s9 = scalar_lea.hbm %s1458_s2, 512  ;;  %p981_p2 = scmp.lt.u32.totalorder %s1237_s30, %s1458_s2 }
  0x39   : > { %p978_p9 = pnand %p977_p8, %p976_p7  ;;  %p982_p6 = scmp.lt.u32.totalorder %s980_s9, %s975_s6 }
  0x3a   : > { %p984_p0 = scmp.lt.u32.totalorder %s975_s6, %s1237_s30 }
  0x3b   : > { %p979_p12 = pneg %p978_p9  ;;  %p983_p1 = por %p982_p6, %p981_p2 }
  0x3d   : > { %p985_p5 = por %p984_p0, %p983_p1 }
  0x3f   : > { %p986_p10 = pnand %p985_p5, %p979_p12 }
  0x41   : > { %989 = shalt.err (!%p986_p10)
}
  0x42   : > { %s990_s20 = scalar_lea.vmem %s1241_s28, 256  ;;  %s1099_s4 = smov [#allocation10]  }
  0x43   : > { %p991_p11 = scmp.ne.s32.totalorder %s1241_s28, %s990_s20  ;;  %s995_s18 = sshll.u32 %s1099_s4, 4  ;;  %s996_s18 = int_to_ptr.vmem [resolvable:$false] %s995_s18 }
  0x44   : > { %s997_s19 = scalar_lea.vmem %s996_s18, 512  ;;  %p998_p9 = scmp.lt.s32.totalorder %s1241_s28, %s996_s18 }
  0x45   : > { %p993_p3 = pnand %p991_p11, %p977_p8  ;;  %p999_p2 = scmp.lt.s32.totalorder %s997_s19, %s990_s20 }
  0x47   : > { %p994_p7 = pneg %p993_p3  ;;  %p1000_p6 = por %p999_p2, %p998_p9 }
  0x49   : > { %p1001_p1 = pnand %p1000_p6, %p994_p7 }
  0x4b   : > { %1004 = shalt.err (!%p1001_p1)
}
  0x4c   : > { %s1100_s6 = smov 128   ;;  %s1101_s7 = smov 8  }
  0x4d   : > { %871 = dma.hbm_to_vmem [thread:$0]  (!%p1199_p4), %s1237_s30, 256, %s1241_s28, %s1250_s27, %s1100_s6, %s1100_s6, %s1101_s7  }
  0x4e   : > { %191 = sbr.rel (%p1189_p13) target bundleno = 811 (0x32b), region = 32  ;;  %p1471_p8 = scmp.ne.s32.totalorder (!%p1189_p13), %s1464_s21, 0 }
  0x55   : > { %1058 = dma.done.wait (%p1471_p8), [#allocation7], 16  }
  0x56   : > { %1060 = vsyncadd (%p1471_p8), [#allocation7], 4294967280 }
  0x57   : > { %1062 = dma.done.wait (%p1471_p8), [#allocation8], 16  }
  0x58   : > { %1064 = vsyncadd (%p1471_p8), [#allocation8], 4294967280  ;;  %s1289_s8 = sand.u32 1, %s1079_s13   ;;  %p1472_p13 = scmp.ne.s32.totalorder %s1465_s22, 0 }
  0x59   : > { %s838_s25 = sshll.u32 %s1289_s8, 4  ;;  %s202_s29 = scalar_lea.sflag [#allocation5], %s1289_s8 }
  0x5a   : > { %s205_s30 = scalar_lea.vmem [#allocation10], %s838_s25 }
  0x5b   : > { %1066 = dma.done.wait (%p1472_p13), %s202_s29, 256  }
  0x5c   : > { %1068 = vsyncadd (%p1472_p13), %s202_s29, 4294967040 }
  0x5d   : > { %210 = sfence }
  0x5e   : > { %v235_v0 = vld [vmem:[%s205_s30] sm:$0xff]  ;;  %vm238_vm0 = vcmask 523264   ;;  %v236_v1 = vld [vmem:[%s205_s30 + $0x8] sm:$0xff]  ;;  %v1102_v6 = vmov 0   ;;  %v247_v7 = vlaneseq  ;;  %v1103_v8 = vmov 1966171168  }
  0x5f   : > { %v239_v2 = vsel %vm238_vm0, %v235_v0, 0.0  ;;  %v447_v3 = vsel %vm238_vm0, %v235_v0, -inf  ;;  %v242_v4 = vsel %vm238_vm0, %v236_v1, 0.0  ;;  %v450_v5 = vsel %vm238_vm0, %v236_v1, -inf  ;;  %941 = vset.pattern.permute.xlu0 %v1102_v6  ;;  %942 = vset.pattern.permute.xlu1 %v1102_v6  ;;  %s841_s21 = sld [smem:[#allocation4 + $0x3]]  ;;  %s652_s22 = sld [smem:[#allocation4]] }
  0x60   : > { %240 = vadd.xlane.f32.xlu0 %v239_v2  ;;  %448 = vmax.xlane.f32.xlu1 %v447_v3  ;;  %v316_v9 = vunpack.c.l.s4 %v1103_v8  ;;  %v1298_v10 = vshrl.u32 %v247_v7, 7  ;;  %vm232_vm1 = vcmask 122880   ;;  %vm426_vm2 = vcmask 130112   ;;  %s839_s28 = sld [smem:[#allocation4 + $0x1]]  ;;  %s1106_s27 = smov 16  }
  0x61   : > { %vm666_vm3 = vcmask 1047680   ;;  %s1107_s9 = smov 113   ;;  %s1108_s10 = smov 127  }
  0x62   : > { %v317_v11 = vunpack.c.0.s8 %v316_v9  ;;  %v1301_v12 = vsub.s32 0, %v1298_v10  ;;  %v1304_v13 = vsub.s32 1, %v1298_v10  ;;  %v1307_v14 = vsub.s32 2, %v1298_v10  ;;  %s677_s11 = sld [smem:[#allocation9]]  ;;  %s840_s20 = sld [smem:[#allocation4 + $0x2]] }
  0x63   : > { %v1310_v15 = vsub.s32 3, %v1298_v10  ;;  %v1313_v16 = vsub.s32 4, %v1298_v10  ;;  %v1316_v17 = vsub.s32 5, %v1298_v10  ;;  %v1319_v18 = vsub.s32 6, %v1298_v10  ;;  %s842_s4 = sld [smem:[#allocation9 + $0x1]]  ;;  %s843_s18 = sld [smem:[#allocation9 + $0x2]] }
  0x64   : > { %243 = vadd.xlane.f32.xlu0 %v242_v4  ;;  %451 = vmax.xlane.f32.xlu1 %v450_v5  ;;  %v1322_v19 = vsub.s32 7, %v1298_v10  ;;  %v1325_v22 = vsub.s32 %v317_v11, %v1298_v10  ;;  %s845_s19 = sshll.u32 %s1087_s15, 4  ;;  %s227_s6 = scalar_lea.vmem [#allocation11], %s1289_s8 }
  0x65   : > { %s726_s7 = sshll.u32 %s227_s6, 4  ;;  %s1406_s30 = scalar_lea.hbm %s1459_s3, %s845_s19  ;;  %s1408_s7 = int_to_ptr.vmem [resolvable:$true] %s726_s7 }
  0x66   : > { %p1473_p12 = scmp.ne.s32.totalorder %s1466_s23, 0  ;;  %s1109_s15 = smov [#allocation11]  }
  0xed   : > { %v241_v20 = vpop.xlane.xlu0 %240  ;;  %v449_v21 = vpop.xlane.xlu1 %448 }
  0xee   : > { %v250_v23 = vrot.slane %v241_v20, %v1301_v12  ;;  %v254_v24 = vrot.slane %v241_v20, %v1304_v13  ;;  %v258_v25 = vrot.slane %v241_v20, %v1307_v14  ;;  %v262_v26 = vrot.slane %v241_v20, %v1310_v15 }
  0xef   : > { %v266_v27 = vrot.slane %v241_v20, %v1313_v16  ;;  %v270_v28 = vrot.slane %v241_v20, %v1316_v17  ;;  %v274_v29 = vrot.slane %v241_v20, %v1319_v18  ;;  %v278_v30 = vrot.slane %v241_v20, %v1322_v19 }
  0xf0   : > { %v311_v31 = vcombine.low %v250_v23, %v254_v24  ;;  %v312_v32 = vcombine.low %v258_v25, %v262_v26  ;;  %v458_v33 = vrot.slane %v449_v21, %v1301_v12  ;;  %v462_v34 = vrot.slane %v449_v21, %v1304_v13 }
  0xf1   : > { %v244_v35 = vpop.xlane.xlu0 %243  ;;  %v313_v36 = vcombine.low %v266_v27, %v270_v28  ;;  %v314_v37 = vcombine.low %v274_v29, %v278_v30  ;;  %v466_v38 = vrot.slane %v449_v21, %v1307_v14  ;;  %v470_v39 = vrot.slane %v449_v21, %v1310_v15  ;;  %v452_v60 = vpop.xlane.xlu1 %451 }
  0xf2   : > { %v321_v40 = vrot.slane %v311_v31, %v1325_v22  ;;  %v328_v41 = vrot.slane %v312_v32, %v1325_v22  ;;  %v282_v42 = vrot.slane %v244_v35, %v1301_v12  ;;  %v286_v43 = vrot.slane %v244_v35, %v1304_v13 }
  0xf3   : > { %v335_v44 = vrot.slane %v313_v36, %v1325_v22  ;;  %v342_v45 = vrot.slane %v314_v37, %v1325_v22  ;;  %v290_v46 = vrot.slane %v244_v35, %v1307_v14  ;;  %v294_v47 = vrot.slane %v244_v35, %v1310_v15 }
  0xf4   : > { %v343_v48 = vcombine.low %v321_v40, %v328_v41  ;;  %v298_v49 = vrot.slane %v244_v35, %v1313_v16  ;;  %v302_v50 = vrot.slane %v244_v35, %v1316_v17  ;;  %v306_v51 = vrot.slane %v244_v35, %v1319_v18 }
  0xf5   : > { %v344_v52 = vcombine.low %v335_v44, %v342_v45  ;;  %v310_v53 = vrot.slane %v244_v35, %v1322_v19  ;;  %v360_v54 = vcombine.low %v282_v42, %v286_v43  ;;  %v361_v55 = vcombine.low %v290_v46, %v294_v47 }
  0xf6   : > { %v351_v56 = vrot.slane %v343_v48, %v1325_v22  ;;  %v362_v57 = vcombine.low %v298_v49, %v302_v50  ;;  %v474_v58 = vrot.slane %v449_v21, %v1313_v16  ;;  %v478_v59 = vrot.slane %v449_v21, %v1316_v17 }
  0xf7   : > { %v358_v61 = vrot.slane %v344_v52, %v1325_v22  ;;  %v363_v62 = vcombine.low %v306_v51, %v310_v53  ;;  %v370_v63 = vrot.slane %v360_v54, %v1325_v22  ;;  %v377_v0 = vrot.slane %v361_v55, %v1325_v22 }
  0xf8   : > { %v384_v1 = vrot.slane %v362_v57, %v1325_v22  ;;  %v482_v2 = vrot.slane %v449_v21, %v1319_v18  ;;  %v486_v3 = vrot.slane %v449_v21, %v1322_v19  ;;  %v519_v4 = vcombine.low %v458_v33, %v462_v34 }
  0xf9   : > { %v359_v5 = vcombine.low %v351_v56, %v358_v61  ;;  %v391_v6 = vrot.slane %v363_v62, %v1325_v22  ;;  %v392_v8 = vcombine.low %v370_v63, %v377_v0  ;;  %v520_v9 = vcombine.low %v466_v38, %v470_v39 }
  0xfa   : > { %v521_v11 = vcombine.low %v474_v58, %v478_v59  ;;  %v522_v20 = vcombine.low %v482_v2, %v486_v3  ;;  %v529_v23 = vrot.slane %v519_v4, %v1325_v22  ;;  %v490_v24 = vrot.slane %v452_v60, %v1301_v12 }
  0xfb   : > { %410 = vperm.xlu0 %941, %v359_v5   ;;  %v393_v25 = vcombine.low %v384_v1, %v391_v6  ;;  %v400_v26 = vrot.slane %v392_v8, %v1325_v22  ;;  %v536_v27 = vrot.slane %v520_v9, %v1325_v22  ;;  %v494_v21 = vrot.slane %v452_v60, %v1304_v13 }
  0xfc   : > { %v543_v28 = vrot.slane %v521_v11, %v1325_v22  ;;  %v550_v29 = vrot.slane %v522_v20, %v1325_v22  ;;  %v498_v30 = vrot.slane %v452_v60, %v1307_v14  ;;  %v502_v31 = vrot.slane %v452_v60, %v1310_v15 }
  0xfd   : > { %v407_v32 = vrot.slane %v393_v25, %v1325_v22  ;;  %v551_v33 = vcombine.low %v529_v23, %v536_v27  ;;  %v506_v12 = vrot.slane %v452_v60, %v1313_v16  ;;  %v510_v34 = vrot.slane %v452_v60, %v1316_v17 }
  0xfe   : > { %v552_v35 = vcombine.low %v543_v28, %v550_v29  ;;  %v514_v36 = vrot.slane %v452_v60, %v1319_v18  ;;  %v518_v13 = vrot.slane %v452_v60, %v1322_v19  ;;  %v568_v37 = vcombine.low %v490_v24, %v494_v21 }
  0xff   : > { %v408_v38 = vcombine.low %v400_v26, %v407_v32  ;;  %v559_v39 = vrot.slane %v551_v33, %v1325_v22  ;;  %v569_v40 = vcombine.low %v498_v30, %v502_v31  ;;  %v570_v14 = vcombine.low %v506_v12, %v510_v34 }
 0x100   : > { %v566_v15 = vrot.slane %v552_v35, %v1325_v22  ;;  %v571_v41 = vcombine.low %v514_v36, %v518_v13  ;;  %v578_v42 = vrot.slane %v568_v37, %v1325_v22  ;;  %v1104_v44 = vmov 0.0  }
 0x101   : > { %413 = vperm.xlu1 %942, %v408_v38   ;;  %v585_v16 = vrot.slane %v569_v40, %v1325_v22  ;;  %v592_v17 = vrot.slane %v570_v14, %v1325_v22  ;;  %233 = vst.msk [vmem:[#allocation2] sm:$0x1] %vm232_vm1, %v1104_v44  ;;  %v1105_v49 = vmov -inf   ;;  %v1386_v50 = vand.u32 127, %v247_v7 }
 0x102   : > { %v567_v18 = vcombine.low %v559_v39, %v566_v15  ;;  %v599_v19 = vrot.slane %v571_v41, %v1325_v22  ;;  %234 = vst.msk [vmem:[#allocation3] sm:$0x1] %vm232_vm1, %v1105_v49  ;;  %v657_v8 = vstv %s841_s21  ;;  %v660_v11 = vstv %s652_s22  ;;  %s714_s21 = scalar_lea.sflag [#allocation6], %s1289_s8  ;;  %s1005_s22 = scalar_lea.vmem %s1408_s7, 16 }
 0x103   : > { %v600_v43 = vcombine.low %v578_v42, %v585_v16  ;;  %v421_v51 = vadd.s32 4294967288, %v1386_v50  ;;  %v419_v52 = vsub.s32 %v1386_v50, %v1298_v10  ;;  %v662_v20 = vstv %s839_s28  ;;  %p1006_p4 = scmp.ne.s32.totalorder %s1408_s7, %s1005_s22  ;;  %s1009_s28 = sshll.u32 %s1109_s15, 4  ;;  %s1010_s28 = int_to_ptr.vmem [resolvable:$false] %s1009_s28 }
 0x104   : > { %v601_v45 = vcombine.low %v592_v17, %v599_v19  ;;  %v673_v29 = vadd.s32 4294967295, %v1386_v50  ;;  %vm687_vm7 = vcmp.lt.s32.totalorder %v1386_v50, 16  ;;  %v694_v30 = vadd.s32 1, %v1386_v50  ;;  %p1012_p10 = scmp.lt.s32.totalorder %s1408_s7, %s1010_s28 }
 0x105   : > { %618 = vperm.xlu1 %942, %v567_v18   ;;  %v608_v46 = vrot.slane %v600_v43, %v1325_v22  ;;  %v424_v53 = vsub.s32 %v421_v51, %v1298_v10  ;;  %v683_v31 = vstv %s677_s11  ;;  %v665_v33 = vstv %s840_s20  ;;  %p1007_p0 = pnand %p1006_p4, %p1473_p12 }
 0x106   : > { %v615_v47 = vrot.slane %v601_v45, %v1325_v22  ;;  %vm674_vm4 = vcmp.ge.s32.totalorder %v673_v29, 0  ;;  %vm675_vm5 = vcmp.lt.s32.totalorder %v673_v29, 16  ;;  %v691_v34 = vstv %s842_s4 }
 0x107   : > { %vm676_vm6 = vmand %vm674_vm4, %vm675_vm5  ;;  %vm696_vm8 = vcmp.lt.s32.totalorder %v694_v30, 16  ;;  %v703_v13 = vstv %s843_s18  ;;  %p1008_p5 = pneg %p1007_p0 }
 0x108   : > { %v616_v48 = vcombine.low %v608_v46, %v615_v47  ;;  %v237_v61 = vld [vmem:[#allocation2] sm:$0x1] }
 0x109   : > { %v446_v3 = vld [vmem:[#allocation3] sm:$0x1] }
 0x10a   : > { %621 = vperm.xlu1 %942, %v616_v48  }
 0x17a   : > { %v411_v54 = vpop.permute.xlu0 %410 }
 0x17b   : > { %v420_v56 = vrot.slane %v411_v54, %v419_v52 }
 0x180   : > { %v414_v55 = vpop.permute.xlu1 %413 }
 0x181   : > { %v425_v57 = vrot.slane %v414_v55, %v424_v53 }
 0x183   : > { %v427_v58 = vsel %vm426_vm2, %v425_v57, %v420_v56 }
 0x184   : > { %v434_v59 = vrot.slane %v427_v58, %v1325_v22  ;;  %v619_v60 = vpop.permute.xlu1 %618 }
 0x185   : > { %v626_v0 = vrot.slane %v619_v60, %v419_v52 }
 0x186   : > { %v441_v7 = vrot.slane %v434_v59, %v1325_v22 }
 0x188   : > { %v443_v62 = vadd.f32 %v441_v7, %v237_v61 }
 0x189   : > { %v622_v63 = vpop.permute.xlu1 %621 }
 0x18a   : > { %445 = vst.msk [vmem:[#allocation2] sm:$0x1] %vm232_vm1, %v443_v62  ;;  %v630_v1 = vrot.slane %v622_v63, %v424_v53 }
 0x18c   : > { %v631_v2 = vsel %vm426_vm2, %v630_v1, %v626_v0 }
 0x18d   : > { %v638_v10 = vrot.slane %v631_v2, %v1325_v22 }
 0x18f   : > { %v645_v4 = vrot.slane %v638_v10, %v1325_v22 }
 0x191   : > { %v647_v5 = vmax.f32 %v446_v3, %v645_v4  ;;  %v656_v6 = vld [vmem:[#allocation2] sm:$0x1] }
 0x192   : > { %v658_v9 = vmul.f32 %v657_v8, %v656_v6 }
 0x193   : > { %648 = vst.msk [vmem:[#allocation3] sm:$0x1] %vm232_vm1, %v647_v5 }
 0x194   : > { %v661_v24 = vmul.f32 %v660_v11, %v658_v9 }
 0x19a   : > { %v659_v23 = vld [vmem:[#allocation3] sm:$0x1] }
 0x19b   : > { %v663_v25 = vmul.f32 %v662_v20, %v659_v23 }
 0x19d   : > { %v664_v26 = vadd.f32 %v663_v25, %v661_v24 }
 0x19f   : > { %667 = vrot.lane.b32.xlu1 %v664_v26, %s1106_s27  ;;  %v690_v35 = vsel %vm687_vm7, %v664_v26, 0.0 }
 0x1a0   : > { %v692_v39 = vmul.f32 %v691_v34, %v690_v35 }
 0x211   : > { %v668_v27 = vpop.permute.xlu1 %667 }
 0x212   : > { %v669_v21 = vsel %vm666_vm3, %v668_v27, %v664_v26 }
 0x213   : > { %670 = vrot.lane.b32.xlu1 %v669_v21, %s1106_s27  ;;  %s1011_s27 = scalar_lea.vmem %s1010_s28, 32 }
 0x214   : > { %p1013_p11 = scmp.lt.s32.totalorder %s1011_s27, %s1005_s22 }
 0x216   : > { %p1014_p3 = por %p1013_p11, %p1012_p10 }
 0x218   : > { %p1015_p7 = pnand %p1014_p3, %p1008_p5 }
 0x285   : > { %v671_v22 = vpop.permute.xlu1 %670 }
 0x286   : > { %v672_v28 = vsel %vm666_vm3, %v671_v22, %v664_v26 }
 0x287   : > { %679 = vrot.lane.b32.xlu1 %v672_v28, %s1107_s9 }
 0x28b   : > { %699 = vrot.lane.b32.xlu1 %v672_v28, %s1108_s10 }
 0x2f9   : > { %v680_v32 = vpop.permute.xlu1 %679 }
 0x2fa   : > { %v682_v12 = vsel %vm676_vm6, %v680_v32, 0.0 }
 0x2fb   : > { %v684_v36 = vmul.f32 %v683_v31, %v682_v12 }
 0x2fd   : > { %v685_v37 = vadd.f32 %v684_v36, %v665_v33  ;;  %v700_v38 = vpop.permute.xlu1 %699 }
 0x2fe   : > { %v702_v40 = vsel %vm696_vm8, %v700_v38, 0.0 }
 0x2ff   : > { %v693_v14 = vadd.f32 %v692_v39, %v685_v37  ;;  %v704_v15 = vmul.f32 %v703_v13, %v702_v40 }
 0x301   : > { %v705_v41 = vadd.f32 %v704_v15, %v693_v14 }
 0x303   : > { %v844_v42 = vmul.f32 -1.442695, %v705_v41 }
 0x305   : > { %943 = vpow2.f32 %v844_v42 }
 0x30f   : > { %v944_v16 = vpop.eup %943 }
 0x310   : > { %v709_v17 = vadd.f32 1.0, %v944_v16 }
 0x312   : > { %945 = vrcp.f32 %v709_v17 }
 0x31c   : > { %v946_v18 = vpop.eup %945 }
 0x31d   : > { %712 = vst.msk [vmem:[%s227_s6] sm:$0x1] %vm232_vm1, %v946_v18 }
 0x31e   : > { %1018 = shalt.err (!%p1015_p7)
}
 0x31f   : > { %s1019_s8 = scalar_lea.hbm %s1406_s30, 16  ;;  %s1023_s11 = scalar_lea.hbm %s1459_s3, 32 }
 0x320   : > { %p1020_p9 = scmp.ne.s32.totalorder %s1406_s30, %s1019_s8  ;;  %p1024_p1 = scmp.lt.u32.totalorder %s1406_s30, %s1459_s3 }
 0x321   : > { %p1025_p8 = scmp.lt.u32.totalorder %s1023_s11, %s1019_s8  ;;  %p1027_p4 = scmp.lt.u32.totalorder %s1019_s8, %s1406_s30 }
 0x322   : > { %p1021_p2 = pnand %p1020_p9, %p1473_p12 }
 0x323   : > { %p1026_p13 = por %p1025_p8, %p1024_p1 }
 0x324   : > { %p1022_p6 = pneg %p1021_p2 }
 0x325   : > { %p1028_p0 = por %p1027_p4, %p1026_p13 }
 0x327   : > { %p1029_p5 = pnand %p1028_p0, %p1022_p6 }
 0x329   : > { %1032 = shalt.err (!%p1029_p5)
}
 0x32a   : > { %859 = dma.vmem_to_hbm [thread:$0]  (%p1473_p12), %s1408_s7, 16, %s1406_s30, %s714_s21  }
 0x32b PF: > { %s738_s18 = sand.u32 1, %s1075_s12   ;;  %p1474_p10 = scmp.ne.s32.totalorder %s1467_s24, 0 }
 0x32c   : > { %p1475_p11 = scmp.ge.s32.totalorder %s1095_s17, 2  ;;  %s739_s19 = scalar_lea.sflag [#allocation6], %s738_s18 }
 0x32e   : > { %p873_p3 = pnand %p1475_p11, %p1474_p10 }
 0x330   : > { %1070 = dma.done.wait (!%p873_p3), %s739_s19, 16  }
 0x331   : > { %1072 = vsyncadd (!%p873_p3), %s739_s19, 4294967280  ;;  %s21_s17 = sadd.s32 1, %s1095_s17   ;;  %s1476_s12 = smov %s1079_s13 }
 0x332   : > { %p18_p7 = scmp.ge.s32.totalorder %s21_s17, 4   ;;  %s1477_s13 = smov %s1083_s14 }
 0x333   : > { %s1478_s14 = smov %s1246_s26  ;;  %s1479_s15 = smov %s1091_s16 }
 0x334   : > { %s1480_s16 = smov %s1482_s5  ;;  %20 = sbr.rel (!%p18_p7) target bundleno = 8 (0x8), region = 95 }
 0x33b   :  { %743 = vsyncpa [#allocation5], 1 }
 0x33c   :  { %745 = vsyncpa [#allocation5 + $0x1], 1 }
 0x33d   :  { %746 = vsyncpa [#allocation6], 1 }
 0x33e   :  { %748 = vsyncpa [#allocation6 + $0x1], 1 }
 0x33f   :  { %749 = vsyncpa [#allocation7], 1 }
 0x340   :  { %751 = vsyncpa [#allocation7 + $0x1], 1 }
 0x341   :  { %752 = vsyncpa [#allocation8], 1 }
 0x342   :  { %754 = vsyncpa [#allocation8 + $0x1], 1 }

</bundles_post_ra>
